<compile_context>
chip_gen: v5e
topology: v5e:2x2
jax: 0.10.0
libtpu: 0.0.40
codegen_flags: <defaults>
</compile_context>

<pallas_src>
import functools
from typing import Sequence

import jax
import jax.numpy as jnp
from jax.experimental import pallas as pl
from jax.experimental.pallas import tpu as pltpu


def _round_up(x: int, m: int) -> int:
    return ((x + m - 1) // m) * m


def _dlif_kernel(*refs, n_groups, out_ch, one_minus_leak, leak_v_leak, v_th):
    """One batch tile of the fused DLIF step.

    refs = (x_cat, w_blk, v_0..v_{n-1}, z, vout_0..vout_{n-1})
      x_cat  : [block_b, total_in]    concatenated group activations
      w_blk  : [total_in, n*out_ch]   block-diagonal weights, pre-scaled by dt*tau_mem_inv
      v_i    : [block_b, out_ch]      dendrite membrane voltages (state in)
      z      : [block_b, out_ch]      spike output
      vout_i : [block_b, out_ch]      reset voltages (state out)
    """
    n = n_groups
    x_ref, w_ref = refs[0], refs[1]
    v_refs = refs[2:2 + n]
    z_ref = refs[2 + n]
    vout_refs = refs[3 + n:3 + 2 * n]

    # One lane-dense MXU matmul instead of n narrow (K<=32) ones; the zero blocks in
    # the block-diagonal weight are free FLOPs (the MXU is >90% idle at such small K).
    cur_all = jnp.dot(x_ref[...], w_ref[...], preferred_element_type=jnp.float32)

    v_news = []
    x0 = None
    for i in range(n):
        # Static lane slice of the fused matmul result. out_ch is 128 here so slices
        # are lane-tile aligned (non-multiples of 128 would cross tile boundaries).
        cur = cur_all[:, i * out_ch:(i + 1) * out_ch]
        v_i = v_refs[i][...]
        # DENDCell leaky integrator with dt*tau_mem_inv folded into the weights:
        #   v_new = v + leak*((v_leak - v) + x@W) = (1-leak)*v + leak*v_leak + x@(leak*W)
        v_new = one_minus_leak * v_i + cur
        if leak_v_leak != 0.0:          # static: skip the add when v_leak == 0
            v_new = v_new + leak_v_leak
        v_news.append(v_new)
        # Same accumulation order as PyTorch: x0 += v_new / n (group 0 NOT divided).
        x0 = v_new if i == 0 else x0 + v_new / n

    # threshold(x0 - v_th, method, alpha): forward pass = Heaviside step.
    # TODO(synk): strict '>' at the boundary (no spike exactly at v_th); adjust if the
    # module's threshold()/torch.heaviside convention differs.
    z = (x0 > v_th).astype(jnp.float32)
    z_ref[...] = z.astype(z_ref.dtype)

    # Spike reset: exactly one store per group, no store-then-rescale readback.
    one_minus_z = 1.0 - z
    for i in range(n):
        vout_refs[i][...] = (one_minus_z * v_news[i]).astype(vout_refs[i].dtype)


def _tpu_vmem_capacity_bytes() -> int:
    """Per-TensorCore VMEM capacity; conservative 64 MiB (v7x) fallback if the query fails."""
    try:
        return int(pltpu.get_tpu_info().vmem_capacity_bytes)
    except Exception:
        return 64 << 20


def _pick_block_b(B: int, max_rows: int, *, min_grid_steps: int = 2) -> int:
    """Batch tile: a multiple of 8, as large as the VMEM budget allows, but never so
    large that the grid collapses below `min_grid_steps` steps (so both of v7x's
    TensorCores get work along the 'parallel' batch axis; harmless on v5e/v6e)."""
    b_pad = _round_up(B, 8)
    block_b = max(8, (max(max_rows, 8) // 8) * 8)
    if b_pad // 8 >= min_grid_steps:
        block_b = min(block_b, _round_up(pl.cdiv(b_pad, min_grid_steps), 8))
    return min(block_b, b_pad)


def dlif_wrapper2_forward(
    groups: Sequence[jax.Array],      # list of [B, in_ch_i] float32
    weights: Sequence[jax.Array],     # list of [in_ch_i, out_ch] float32 (pre-transposed)
    vs: Sequence[jax.Array],          # list of [B, out_ch] float32 dendrite voltages
    *,
    dt: float = 1e-3,
    tau_mem_inv: float = 100.0,
    v_leak: float = 0.0,
    v_th: float = 0.5,
    z_dtype=jnp.float32,              # int8 saves ~10% HBM writeback if caller accepts it
):
    n = len(groups)
    B = groups[0].shape[0]
    out_ch = weights[0].shape[1]
    leak = float(dt) * float(tau_mem_inv)

    # ---- host-side prep ------------------------------------------------------
    # Concatenate groups into one lane-dense activation and build a block-diagonal
    # weight with dt*tau_mem_inv folded in, so the kernel runs a single MXU matmul.
    x_cat = jnp.concatenate([g.astype(jnp.float32) for g in groups], axis=1)
    total_in = x_cat.shape[1]
    w_blk = jnp.zeros((total_in, n * out_ch), jnp.float32)
    row = 0
    for i, w in enumerate(weights):
        ic = w.shape[0]
        w_blk = w_blk.at[row:row + ic, i * out_ch:(i + 1) * out_ch].set(
            w.astype(jnp.float32) * leak)
        row += ic

    # ---- generation-aware VMEM budgeting --------------------------------------
    vmem_cap = _tpu_vmem_capacity_bytes()            # 64 MiB v7x, 128 MiB v5e/v6e
    vmem_limit_cap = (3 * vmem_cap) // 4             # ~48 MiB v7x, ~96 MiB v5e/v6e
    tile_budget = (16 << 20) if vmem_cap <= (64 << 20) else (40 << 20)

    lane = 128
    out_pad = _round_up(out_ch, lane)
    z_bytes = jnp.dtype(z_dtype).itemsize
    # Batch-tiled bytes per row, including 128-lane padding of every operand.
    tiled_bpr = 4 * _round_up(total_in, lane)        # x_cat in
    tiled_bpr += 4 * out_pad * n                     # v in
    tiled_bpr += z_bytes * out_pad + 4 * out_pad * n # z + v out
    # Live in-kernel temporaries (cur_all + v_news), single-buffered.
    live_bpr = 2 * 4 * out_pad * n
    # Resident weights (double-buffered by the default pipeline; constant index_map
    # means they are only fetched once, but both buffers are still allocated).
    weight_bytes = 4 * _round_up(total_in, 8) * _round_up(n * out_ch, lane)

    avail = max(tile_budget - 2 * weight_bytes, 4 << 20)
    max_rows = avail // max(2 * tiled_bpr + live_bpr, 1)
    block_b = _pick_block_b(B, max_rows, min_grid_steps=2)
    grid = (pl.cdiv(B, block_b),)     # partial last block is fine: rows are independent

    vmem_est = (2 * block_b * tiled_bpr + block_b * live_bpr
                + 2 * weight_bytes + (2 << 20))
    vmem_limit_bytes = int(min(max(vmem_est, 32 << 20), vmem_limit_cap))

    # ---- specs -----------------------------------------------------------------
    in_specs = [
        pl.BlockSpec((block_b, total_in), lambda b: (b, 0)),      # activations (tiled)
        pl.BlockSpec((total_in, n * out_ch), lambda b: (0, 0)),   # weights (resident)
    ]
    in_specs += [pl.BlockSpec((block_b, out_ch), lambda b: (b, 0)) for _ in vs]

    out_shape = tuple(
        [jax.ShapeDtypeStruct((B, out_ch), z_dtype)]
        + [jax.ShapeDtypeStruct((B, out_ch), jnp.float32)] * n)
    out_specs = tuple(
        [pl.BlockSpec((block_b, out_ch), lambda b: (b, 0))] * (1 + n))

    kernel = functools.partial(
        _dlif_kernel,
        n_groups=n,
        out_ch=out_ch,
        one_minus_leak=1.0 - leak,
        leak_v_leak=leak * float(v_leak),
        v_th=float(v_th),
    )

    outs = pl.pallas_call(
        kernel,
        grid=grid,
        in_specs=in_specs,
        out_specs=out_specs,
        out_shape=out_shape,
        # In-place SNN state update (effective when the caller donates vs):
        # v_i is input 2+i and aliases voltage output 1+i.
        input_output_aliases={2 + i: 1 + i for i in range(n)},
        compiler_params=pltpu.CompilerParams(
            dimension_semantics=("parallel",),
            vmem_limit_bytes=vmem_limit_bytes,
        ),
    )(x_cat, w_blk, *vs)

    z = outs[0]
    v_out = list(outs[1:])
    return z, v_out


def _reference_forward(groups, weights, vs, *, dt, tau_mem_inv, v_leak, v_th):
    """Pure-JAX reference mirroring the PyTorch forward (unfused, unscaled weights)."""
    n = len(groups)
    leak = dt * tau_mem_inv
    v_news = []
    x0 = None
    for i in range(n):
        cur = groups[i] @ weights[i]
        v_new = vs[i] + leak * ((v_leak - vs[i]) + cur)
        v_news.append(v_new)
        x0 = v_new if i == 0 else x0 + v_new / n
    z = (x0 - v_th > 0.0).astype(jnp.float32)
    v_out = [(1.0 - z) * v for v in v_news]
    return z, v_out


if __name__ == "__main__":
    key = jax.random.PRNGKey(0)

    # Small shapes consistent with the module: 3 input groups of different widths.
    in_channels = (16, 32, 8)
    out_channels = 128
    batch = 16

    dt = 1e-3
    tau_mem_inv = 100.0
    v_leak = 0.0
    v_th = 0.5

    keys = jax.random.split(key, 3 * len(in_channels))
    groups, weights, vs = [], [], []
    k_idx = 0
    for ic in in_channels:
        groups.append(jax.random.normal(keys[k_idx], (batch, ic), jnp.float32))
        k_idx += 1
    for ic in in_channels:
        # nn.Linear(ic, out) weight is [out, ic]; store transposed [ic, out].
        bound = 1.0 / (ic ** 0.5)
        weights.append(
            jax.random.uniform(keys[k_idx], (ic, out_channels), jnp.float32,
                               minval=-bound, maxval=bound))
        k_idx += 1
    for _ in in_channels:
        vs.append(jax.random.normal(keys[k_idx], (batch, out_channels),
                                    jnp.float32) * 0.1)
        k_idx += 1

    z_ref, v_ref = _reference_forward(
        groups, weights, vs,
        dt=dt, tau_mem_inv=tau_mem_inv, v_leak=v_leak, v_th=v_th)

    z, v_out = dlif_wrapper2_forward(
        groups, weights, vs,
        dt=dt, tau_mem_inv=tau_mem_inv, v_leak=v_leak, v_th=v_th)
    jax.block_until_ready(z)
    for v in v_out:
        jax.block_until_ready(v)

    assert z.shape == (batch, out_channels)
    assert jnp.allclose(z, z_ref, atol=1e-5), "spike output mismatch"
    for a, b in zip(v_out, v_ref):
        assert jnp.allclose(a, b, atol=1e-5), "voltage state mismatch"

    print("KERNEL_OK")
</pallas_src>

<mosaic_0001>
module attributes {stable_mosaic.version = 11 : i64} {
  func.func @_dlif_kernel(%arg0: i32, %arg1: memref<8x56xf32, #tpu.memory_space<vmem>>, %arg2: memref<56x384xf32, #tpu.memory_space<vmem>>, %arg3: memref<8x128xf32, #tpu.memory_space<vmem>>, %arg4: memref<8x128xf32, #tpu.memory_space<vmem>>, %arg5: memref<8x128xf32, #tpu.memory_space<vmem>>, %arg6: memref<8x128xf32, #tpu.memory_space<vmem>>, %arg7: memref<8x128xf32, #tpu.memory_space<vmem>>, %arg8: memref<8x128xf32, #tpu.memory_space<vmem>>, %arg9: memref<8x128xf32, #tpu.memory_space<vmem>>) attributes {dimension_semantics = [#tpu.dimension_semantics<parallel>], iteration_bounds = array<i64: 2>, scalar_prefetch = 0 : i64, scratch_operands = 0 : i64, tpu.core_type = #tpu.core_type<tc>, window_params = [{transform_indices = @transform_0, window_bounds = array<i64: 8, 56>}, {pipeline_mode = #tpu.pipeline_mode<synchronous>, transform_indices = @transform_1, window_bounds = array<i64: 56, 384>}, {transform_indices = @transform_2, window_bounds = array<i64: 8, 128>}, {transform_indices = @transform_3, window_bounds = array<i64: 8, 128>}, {transform_indices = @transform_4, window_bounds = array<i64: 8, 128>}, {transform_indices = @transform_5, window_bounds = array<i64: 8, 128>}, {transform_indices = @transform_6, window_bounds = array<i64: 8, 128>}, {transform_indices = @transform_7, window_bounds = array<i64: 8, 128>}, {transform_indices = @transform_8, window_bounds = array<i64: 8, 128>}]} {
    %c0 = arith.constant 0 : index
    %c0_0 = arith.constant 0 : index
    %0 = vector.load %arg1[%c0, %c0_0] : memref<8x56xf32, #tpu.memory_space<vmem>>, vector<8x56xf32>
    %c0_1 = arith.constant 0 : index
    %c0_2 = arith.constant 0 : index
    %1 = vector.load %arg2[%c0_1, %c0_2] : memref<56x384xf32, #tpu.memory_space<vmem>>, vector<56x384xf32>
    %cst = arith.constant dense<0.000000e+00> : vector<8x384xf32>
    %2 = tpu.matmul %0, %1, %cst {dimension_numbers = #tpu.dot_dimension_numbers<[1], [0], [0], [1], [0, 0, 1, 1], [], []>} : vector<8x56xf32>, vector<56x384xf32>, vector<8x384xf32> -> vector<8x384xf32>
    %3 = vector.extract_strided_slice %2 {offsets = [0, 0], sizes = [8, 128], strides = [1, 1]} : vector<8x384xf32> to vector<8x128xf32>
    %c0_3 = arith.constant 0 : index
    %c0_4 = arith.constant 0 : index
    %4 = vector.load %arg3[%c0_3, %c0_4] : memref<8x128xf32, #tpu.memory_space<vmem>>, vector<8x128xf32>
    %cst_5 = arith.constant 0.899999976 : f32
    %5 = vector.broadcast %cst_5 : f32 to vector<8x128xf32>
    %6 = arith.mulf %5, %4 : vector<8x128xf32>
    %7 = arith.addf %6, %3 : vector<8x128xf32>
    %8 = vector.extract_strided_slice %2 {offsets = [0, 128], sizes = [8, 128], strides = [1, 1]} : vector<8x384xf32> to vector<8x128xf32>
    %c0_6 = arith.constant 0 : index
    %c0_7 = arith.constant 0 : index
    %9 = vector.load %arg4[%c0_6, %c0_7] : memref<8x128xf32, #tpu.memory_space<vmem>>, vector<8x128xf32>
    %cst_8 = arith.constant 0.899999976 : f32
    %10 = vector.broadcast %cst_8 : f32 to vector<8x128xf32>
    %11 = arith.mulf %10, %9 : vector<8x128xf32>
    %12 = arith.addf %11, %8 : vector<8x128xf32>
    %cst_9 = arith.constant 3.000000e+00 : f32
    %13 = vector.broadcast %cst_9 : f32 to vector<8x128xf32>
    %14 = arith.divf %12, %13 : vector<8x128xf32>
    %15 = arith.addf %7, %14 : vector<8x128xf32>
    %16 = vector.extract_strided_slice %2 {offsets = [0, 256], sizes = [8, 128], strides = [1, 1]} : vector<8x384xf32> to vector<8x128xf32>
    %c0_10 = arith.constant 0 : index
    %c0_11 = arith.constant 0 : index
    %17 = vector.load %arg5[%c0_10, %c0_11] : memref<8x128xf32, #tpu.memory_space<vmem>>, vector<8x128xf32>
    %cst_12 = arith.constant 0.899999976 : f32
    %18 = vector.broadcast %cst_12 : f32 to vector<8x128xf32>
    %19 = arith.mulf %18, %17 : vector<8x128xf32>
    %20 = arith.addf %19, %16 : vector<8x128xf32>
    %cst_13 = arith.constant 3.000000e+00 : f32
    %21 = vector.broadcast %cst_13 : f32 to vector<8x128xf32>
    %22 = arith.divf %20, %21 : vector<8x128xf32>
    %23 = arith.addf %15, %22 : vector<8x128xf32>
    %cst_14 = arith.constant 5.000000e-01 : f32
    %24 = vector.broadcast %cst_14 : f32 to vector<8x128xf32>
    %25 = arith.cmpf ogt, %23, %24 : vector<8x128xf32>
    %26 = arith.extui %25 : vector<8x128xi1> to vector<8x128xi32>
    %27 = arith.sitofp %26 : vector<8x128xi32> to vector<8x128xf32>
    %c0_15 = arith.constant 0 : index
    %c0_16 = arith.constant 0 : index
    %28 = vector.load %arg6[%c0_15, %c0_16] : memref<8x128xf32, #tpu.memory_space<vmem>>, vector<8x128xf32>
    tpu.vector_store %arg6[%c0_15, %c0_16], %27 {strides = array<i32>} : memref<8x128xf32, #tpu.memory_space<vmem>>, vector<8x128xf32>,
    %cst_17 = arith.constant 1.000000e+00 : f32
    %29 = vector.broadcast %cst_17 : f32 to vector<8x128xf32>
    %30 = arith.subf %29, %27 : vector<8x128xf32>
    %31 = arith.mulf %30, %7 : vector<8x128xf32>
    %c0_18 = arith.constant 0 : index
    %c0_19 = arith.constant 0 : index
    %32 = vector.load %arg7[%c0_18, %c0_19] : memref<8x128xf32, #tpu.memory_space<vmem>>, vector<8x128xf32>
    tpu.vector_store %arg7[%c0_18, %c0_19], %31 {strides = array<i32>} : memref<8x128xf32, #tpu.memory_space<vmem>>, vector<8x128xf32>,
    %33 = arith.mulf %30, %12 : vector<8x128xf32>
    %c0_20 = arith.constant 0 : index
    %c0_21 = arith.constant 0 : index
    %34 = vector.load %arg8[%c0_20, %c0_21] : memref<8x128xf32, #tpu.memory_space<vmem>>, vector<8x128xf32>
    tpu.vector_store %arg8[%c0_20, %c0_21], %33 {strides = array<i32>} : memref<8x128xf32, #tpu.memory_space<vmem>>, vector<8x128xf32>,
    %35 = arith.mulf %30, %20 : vector<8x128xf32>
    %c0_22 = arith.constant 0 : index
    %c0_23 = arith.constant 0 : index
    %36 = vector.load %arg9[%c0_22, %c0_23] : memref<8x128xf32, #tpu.memory_space<vmem>>, vector<8x128xf32>
    tpu.vector_store %arg9[%c0_22, %c0_23], %35 {strides = array<i32>} : memref<8x128xf32, #tpu.memory_space<vmem>>, vector<8x128xf32>,
    return
  }
  func.func @transform_0(%arg0: i32) -> (i32, i32) {
    %c0_i32 = arith.constant 0 : i32
    %c0_i32_0 = arith.constant 0 : i32
    return %arg0, %c0_i32 : i32, i32
  }
  func.func @transform_1(%arg0: i32) -> (i32, i32) {
    %c0_i32 = arith.constant 0 : i32
    %c0_i32_0 = arith.constant 0 : i32
    %c0_i32_1 = arith.constant 0 : i32
    return %c0_i32, %c0_i32_0 : i32, i32
  }
  func.func @transform_2(%arg0: i32) -> (i32, i32) {
    %c0_i32 = arith.constant 0 : i32
    %c0_i32_0 = arith.constant 0 : i32
    return %arg0, %c0_i32 : i32, i32
  }
  func.func @transform_3(%arg0: i32) -> (i32, i32) {
    %c0_i32 = arith.constant 0 : i32
    %c0_i32_0 = arith.constant 0 : i32
    return %arg0, %c0_i32 : i32, i32
  }
  func.func @transform_4(%arg0: i32) -> (i32, i32) {
    %c0_i32 = arith.constant 0 : i32
    %c0_i32_0 = arith.constant 0 : i32
    return %arg0, %c0_i32 : i32, i32
  }
  func.func @transform_5(%arg0: i32) -> (i32, i32) {
    %c0_i32 = arith.constant 0 : i32
    %c0_i32_0 = arith.constant 0 : i32
    return %arg0, %c0_i32 : i32, i32
  }
  func.func @transform_6(%arg0: i32) -> (i32, i32) {
    %c0_i32 = arith.constant 0 : i32
    %c0_i32_0 = arith.constant 0 : i32
    return %arg0, %c0_i32 : i32, i32
  }
  func.func @transform_7(%arg0: i32) -> (i32, i32) {
    %c0_i32 = arith.constant 0 : i32
    %c0_i32_0 = arith.constant 0 : i32
    return %arg0, %c0_i32 : i32, i32
  }
  func.func @transform_8(%arg0: i32) -> (i32, i32) {
    %c0_i32 = arith.constant 0 : i32
    %c0_i32_0 = arith.constant 0 : i32
    return %arg0, %c0_i32 : i32, i32
  }
}

</mosaic_0001>

<bundles_post_ra>
// kernel: tpu_custom_call.1
= control target key start
LH: loop header
LB: loop body
LE: loop exit
PB: predicated region body
PF: predicated region fallthrough
CT: control target
= control target key end

     0   :  { %s1674_s0 = inlined_call_operand.vmem [shape: f32[16,56], index: 0, kind: input, shape index: {}]   ;;  %s1675_s1 = inlined_call_operand.hbm [shape: f32[56,384], index: 1, kind: input, shape index: {}]   ;;  %s1676_s2 = inlined_call_operand.hbm [shape: f32[16,128], index: 2, kind: input, shape index: {}, may-alias: {2,6}]   ;;  %s1677_s3 = inlined_call_operand.hbm [shape: f32[16,128], index: 3, kind: input, shape index: {}, may-alias: {3,7}]   ;;  %s1678_s4 = inlined_call_operand.hbm [shape: f32[16,128], index: 4, kind: input, shape index: {}, may-alias: {4,8}]   ;;  %s1679_s5 = inlined_call_operand.hbm [shape: f32[16,128], index: 5, kind: output, shape index: {0}]   ;;  %s1680_s6 = inlined_call_operand.hbm [shape: f32[16,128], index: 6, kind: output, shape index: {1}, may-alias: {2,6}]   ;;  %s1681_s7 = inlined_call_operand.hbm [shape: f32[16,128], index: 7, kind: output, shape index: {2}, may-alias: {3,7}]   ;;  %s1682_s8 = inlined_call_operand.hbm [shape: f32[16,128], index: 8, kind: output, shape index: {3}, may-alias: {4,8}]  }
   0x1   :  { %1695 = sst [smem:[#allocation28_spill]] %s1675_s1 }
   0x2   :  { %1696 = sst [smem:[#allocation29_spill]] %s1676_s2 }
   0x3   :  { %14 = vsyncpa [#allocation3], 0 }
   0x4   :  { %15 = vsyncpa [#allocation6], 0 }
   0x5   :  { %17 = vsyncpa [#allocation6 + $0x1], 0 }
   0x6   :  { %18 = vsyncpa [#allocation9], 0 }
   0x7   :  { %20 = vsyncpa [#allocation9 + $0x1], 0 }
   0x8   :  { %21 = vsyncpa [#allocation4], 0 }
   0x9   :  { %23 = vsyncpa [#allocation4 + $0x1], 0 }
   0xa   :  { %24 = vsyncpa [#allocation12], 0 }
   0xb   :  { %26 = vsyncpa [#allocation12 + $0x1], 0 }
   0xc   :  { %27 = vsyncpa [#allocation15], 0 }
   0xd   :  { %29 = vsyncpa [#allocation15 + $0x1], 0  ;;  %s1343_s27 = smov 0   ;;  %s1345_s28 = smov 0  }
   0xe   :  { %s1347_s29 = smov 0   ;;  %s1349_s30 = smov 0  }
   0xf LB: > { %1697 = sst [smem:[#allocation22_spill]] %s1279_s27  ;;  %s1364_s9 = sadd.s32 4294967295, %s1291_s30   ;;  %s1291_s30 = sphi %s1349_s30, %s1724_s30   ;;  %s1287_s29 = sphi %s1347_s29, %s1728_s29   ;;  %s1283_s28 = sphi %s1345_s28, %s1727_s28   ;;  %s1279_s27 = sphi %s1343_s27, %s1726_s27  }
  0x10   : > { %1698 = sst [smem:[#allocation23_spill]] %s1291_s30  ;;  %s1683_s10 = sadd.s32 4294967294, %s1291_s30  }
  0x11   : > { %s1368_s11 = sadd.s32 1, %s1291_s30   ;;  %s89_s12 = sadd.s32 1, %s1287_s29 }
  0x12   : > { %1699 = sst [smem:[#allocation24_spill]] %s1368_s11  ;;  %s86_s13 = ssub.s32 %s1291_s30, %s1368_s11 }
  0x13   : > { %p96_p0 = scmp.ne.s32.totalorder %s1287_s29, %s1283_s28  ;;  %p87_p1 = scmp.eq.s32.totalorder %s86_s13, 0 }
  0x14   : > { %p97_p2 = scmp.eq.s32.totalorder %s1291_s30, 0  ;;  %p102_p3 = scmp.ne.s32.totalorder %s1283_s28, %s1279_s27 }
  0x15   : > { %p178_p4 = scmp.eq.s32.totalorder %s1364_s9, 1  ;;  %p184_p7 = scmp.eq.s32.totalorder %s1683_s10, 1 }
  0x16   : > { %s1380_s14 = scalar_select %p87_p1, %s1287_s29, %s89_s12  }
  0x17   : > { %p1382_p5 = por %p97_p2, %p96_p0  ;;  %p1386_p6 = por %p178_p4, %p96_p0 }
  0x18   : > { %1700 = sst [smem:[#allocation25_spill]] %s1380_s14  ;;  %p963_p9 = scmp.lt.s32.totalorder %s1291_s30, 2 }
  0x19   : > { %p1397_p10 = por %p184_p7, %p102_p3  ;;  %s303_s18 = sand.u32 1, %s1291_s30  }
  0x1a   : > { %s1684_s19 = sand.u32 1, %s1287_s29   ;;  %s1408_s21 = sshll.u32 %s1291_s30, 3 }
  0x1b   : > { %s1703_s17 = scalar_select %p1397_p10, 1, 0 }
  0x1c   : > { %s1405_s20 = sshll.u32 %s1684_s19, 3  ;;  %s1705_s2 = sld [smem:[#allocation29_spill]] }
  0x1d   : > { %1704 = sst [smem:[#allocation26_spill]] %s1703_s17  ;;  %s307_s26 = scalar_lea.vmem [#allocation5], %s1405_s20 }
  0x1e   : > { %s315_s12 = sshll.u32 %s307_s26, 4  ;;  %p1417_p11 = pnand %p963_p9, %p1382_p5  ;;  %s316_s12 = int_to_ptr.vmem [resolvable:$true] %s315_s12 }
  0x1f   : > { %p1687_p12 = scmp.eq.s32.totalorder %s1364_s9, 0  ;;  %p884_p13 = scmp.ge.s32.totalorder %s1291_s30, 1 }
  0x20   : > { %p269_p0 = scmp.lt.s32.totalorder %s1291_s30, 3  ;;  %s1433_s23 = scalar_lea.sflag [#allocation6], %s303_s18 }
  0x21   : > { %p1429_p1 = por %p1687_p12, %p102_p3  ;;  %p1009_p4 = pneg %p1417_p11 }
  0x22   : > { %s311_s24 = scalar_lea.hbm %s1705_s2, %s1408_s21  ;;  %s1012_s19 = scalar_lea.hbm %s1705_s2, 16 }
  0x23   : > { %s313_s25 = sshll.u32 %s311_s24, 4  ;;  %s314_s25 = int_to_ptr.hbm [resolvable:$true] %s313_s25 }
  0x24   : > { %s1005_s24 = sshra.s32 %s314_s25, 4  ;;  %s1006_s24 = int_to_ptr.hbm [resolvable:$true] %s1005_s24 }
  0x25   : > { %s1007_s15 = scalar_lea.hbm %s1006_s24, 8  ;;  %p1013_p3 = scmp.lt.s32.totalorder %s1006_s24, %s1705_s2 }
  0x26   : > { %p1008_p2 = scmp.ne.s32.totalorder %s1006_s24, %s1007_s15  ;;  %p1014_p9 = scmp.lt.s32.totalorder %s1012_s19, %s1007_s15 }
  0x28   : > { %p1010_p5 = pnand %p1009_p4, %p1008_p2  ;;  %p1015_p8 = por %p1014_p9, %p1013_p3 }
  0x2a   : > { %p1011_p7 = pneg %p1010_p5 }
  0x2c   : > { %p1016_p12 = pnand %p1015_p8, %p1011_p7 }
  0x2e   : > { %1019 = shalt.err (!%p1016_p12)
}
  0x2f   : > { %942 = dma.hbm_to_vmem [thread:$0]  (!%p1417_p11), %s314_s25, 128, %s316_s12, %s1433_s23  }
  0x30   : > { %p1453_p2 = pnand %p884_p13, %p269_p0  ;;  %s1709_s1 = sld [smem:[#allocation28_spill]] }
  0x31   : > { %s1293_s19 = smov [#allocation2]   ;;  %p1710_p12 = scmp.eq.s32.totalorder %s1364_s9, 0 }
  0x32   : > { %p935_p8 = pneg %p1453_p2  ;;  %s282_s24 = sshll.u32 %s1293_s19, 4  ;;  %s283_s24 = int_to_ptr.vmem [resolvable:$true] %s282_s24 }
  0x33   : > { %s330_s15 = scalar_lea.hbm %s1677_s3, %s1408_s21  ;;  %s1294_s2 = smov 384  }
  0x34   : > { %p936_p5 = pnand %p935_p8, %p1710_p12  ;;  %s332_s26 = sshll.u32 %s330_s15, 4  ;;  %s333_s26 = int_to_ptr.hbm [resolvable:$true] %s332_s26 }
  0x35   : > { %s1295_s30 = smov 24   ;;  %s326_s11 = scalar_lea.vmem [#allocation7], %s1405_s20 }
  0x36   : > { %s280_s18 = sshll.u32 %s1709_s1, 4  ;;  %s334_s14 = sshll.u32 %s326_s11, 4  ;;  %s281_s18 = int_to_ptr.hbm [resolvable:$true] %s280_s18  ;;  %s335_s14 = int_to_ptr.vmem [resolvable:$true] %s334_s14 }
  0x37   : > { %938 = dma.hbm_to_vmem [thread:$0]  (!%p936_p5), %s281_s18, 2688, %s283_s24, [#allocation3], %s1294_s2, %s1294_s2, %s1295_s30  }
  0x38   : > { %s1065_s1 = sshra.s32 %s333_s26, 4  ;;  %s1072_s25 = scalar_lea.hbm %s1677_s3, 16  ;;  %s1066_s1 = int_to_ptr.hbm [resolvable:$true] %s1065_s1 }
  0x39   : > { %s1067_s17 = scalar_lea.hbm %s1066_s1, 8  ;;  %p1073_p3 = scmp.lt.s32.totalorder %s1066_s1, %s1677_s3 }
  0x3a   : > { %p1068_p13 = scmp.ne.s32.totalorder %s1066_s1, %s1067_s17  ;;  %p1074_p9 = scmp.lt.s32.totalorder %s1072_s25, %s1067_s17 }
  0x3c   : > { %p1070_p0 = pnand %p1068_p13, %p1009_p4  ;;  %p1075_p8 = por %p1074_p9, %p1073_p3 }
  0x3e   : > { %p1071_p7 = pneg %p1070_p0 }
  0x40   : > { %p1076_p12 = pnand %p1075_p8, %p1071_p7 }
  0x42   : > { %1079 = shalt.err (!%p1076_p12)
}
  0x43   : > { %945 = dma.hbm_to_vmem [thread:$0]  (!%p1417_p11), %s333_s26, 128, %s335_s14, %s1433_s23  }
  0x44   : > { %s349_s27 = scalar_lea.hbm %s1678_s4, %s1408_s21  ;;  %s345_s24 = scalar_lea.vmem [#allocation8], %s1405_s20 }
  0x45   : > { %s351_s18 = sshll.u32 %s349_s27, 4  ;;  %s353_s11 = sshll.u32 %s345_s24, 4  ;;  %s352_s18 = int_to_ptr.hbm [resolvable:$true] %s351_s18  ;;  %s354_s11 = int_to_ptr.vmem [resolvable:$true] %s353_s11 }
  0x46   : > { %s1711_s1 = sand.u32 1, %s1287_s29   ;;  %s1095_s19 = sshra.s32 %s352_s18, 4  ;;  %s1096_s19 = int_to_ptr.hbm [resolvable:$true] %s1095_s19 }
  0x47   : > { %s342_s17 = scalar_lea.sflag [#allocation9], %s1711_s1  ;;  %s1097_s25 = scalar_lea.hbm %s1096_s19, 8 }
  0x48   : > { %p1098_p5 = scmp.ne.s32.totalorder %s1096_s19, %s1097_s25  ;;  %s1102_s14 = scalar_lea.hbm %s1678_s4, 16 }
  0x49   : > { %p1103_p7 = scmp.lt.s32.totalorder %s1096_s19, %s1678_s4  ;;  %p1104_p3 = scmp.lt.s32.totalorder %s1102_s14, %s1097_s25 }
  0x4a   : > { %p1100_p13 = pnand %p1098_p5, %p1009_p4 }
  0x4b   : > { %p1105_p9 = por %p1104_p3, %p1103_p7 }
  0x4c   : > { %p1101_p0 = pneg %p1100_p13 }
  0x4e   : > { %p1106_p8 = pnand %p1105_p9, %p1101_p0 }
  0x50   : > { %1109 = shalt.err (!%p1106_p8)
}
  0x51   : > { %948 = dma.hbm_to_vmem [thread:$0]  (!%p1417_p11), %s352_s18, 128, %s354_s11, %s342_s17  }
  0x52   : > { %362 = sbr.rel (%p1453_p2) target bundleno = 291 (0x123), region = 40 }
  0x57   : > { %p1712_p4 = scmp.eq.s32.totalorder %s1364_s9, 0 }
  0x59   : > { %1254 = dma.done.wait (%p1712_p4), [#allocation3], 2688   ;;  %p1713_p12 = pmov %p1712_p4 }
  0x5a   : > { %s1694_s20 = sand.u32 1, %s1364_s9   ;;  %s1507_s15 = sand.u32 1, %s1283_s28  }
  0x5b   : > { %1256 = vsyncadd (%p1713_p12), [#allocation3], 4294964608  ;;  %s1510_s2 = sshll.u32 %s1507_s15, 3  ;;  %s370_s13 = scalar_lea.sflag [#allocation6], %s1694_s20 }
  0x5c   : > { %s373_s10 = scalar_lea.vmem [#allocation5], %s1510_s2 }
  0x5d   : > { %1258 = dma.done.wait (%p1429_p1), %s370_s13, 256  }
  0x5e   : > { %1260 = vsyncadd (%p1429_p1), %s370_s13, 4294967040  ;;  %s383_s30 = scalar_lea.vmem [#allocation7], %s1510_s2  ;;  %s390_s27 = scalar_lea.sflag [#allocation9], %s1507_s15 }
  0x5f   : > { %s393_s18 = scalar_lea.vmem [#allocation8], %s1510_s2 }
  0x60   : > { %1262 = dma.done.wait (%p1429_p1), %s390_s27, 128  }
  0x61   : > { %1264 = vsyncadd (%p1429_p1), %s390_s27, 4294967168  ;;  %p456_p11 = scmp.lt.s32.totalorder %s1364_s9, 1  ;;  %v481_v0 = vld [vmem:[#allocation2 + $0xa0] sm:$0xff]  ;;  %v478_v1 = vld [vmem:[#allocation2 + $0x88] sm:$0xff]  ;;  %vm482_vm0 = vcmask 457728   ;;  %v1296_v22 = vmov 3.0  }
  0x62   : > { %v480_v2 = vld [vmem:[#allocation2 + $0x98] sm:$0xff]  ;;  %535 = vmatpush.msra.mxu2 %v481_v0  ;;  %v479_v3 = vld [vmem:[#allocation2 + $0x90] sm:$0xff]  ;;  %v477_v4 = vld [vmem:[#allocation2 + $0x80] sm:$0xff]  ;;  %1003 = vrcp.f32 %v1296_v22  ;;  %s1538_s19 = sshll.u32 %s1364_s9, 3  ;;  %s441_s14 = scalar_lea.vmem [#allocation11], %s1510_s2  ;;  %v1297_v45 = vmov 0.0  }
  0x63   : > { %515 = vmatpush.msra.mxu1 %v480_v2  ;;  %s457_s24 = scalar_select %p456_p11, %s1364_s9, 1  ;;  %v475_v5 = vld [vmem:[#allocation2 + $0x70] sm:$0xff]  ;;  %495 = vmatpush.msra.mxu0 %v479_v3  ;;  %v476_v6 = vld [vmem:[#allocation2 + $0x78] sm:$0xff]  ;;  %v474_v7 = vld [vmem:[#allocation2 + $0x68] sm:$0xff] }
  0x64   : > { %536 = vmatpush.msra.mxu2 %v478_v1  ;;  %v473_v8 = vld [vmem:[#allocation2 + $0x60] sm:$0xff]  ;;  %v472_v9 = vld [vmem:[#allocation2 + $0x58] sm:$0xff]  ;;  %v471_v10 = vld [vmem:[#allocation2 + $0x50] sm:$0xff]  ;;  %s617_s26 = scalar_lea.hbm %s1680_s6, %s1538_s19  ;;  %s1547_s21 = sshll.u32 %s441_s14, 4 }
  0x65   : > { %516 = vmatpush.msra.mxu1 %v477_v4  ;;  %496 = vmatpush.msra.mxu0 %v476_v6  ;;  %v470_v11 = vld [vmem:[#allocation2 + $0x48] sm:$0xff]  ;;  %s902_s22 = sshll.u32 %s457_s24, 3  ;;  %v469_v12 = vld [vmem:[#allocation2 + $0x40] sm:$0xff]  ;;  %v468_v13 = vld [vmem:[#allocation2 + $0x38] sm:$0xff]  ;;  %1714 = sst [smem:[#allocation27_spill]] %s1547_s21 }
  0x66   : > { %537 = vmatpush.msra.mxu2 %v475_v5  ;;  %v467_v14 = vld [vmem:[#allocation2 + $0x30] sm:$0xff]  ;;  %v466_v15 = vld [vmem:[#allocation2 + $0x28] sm:$0xff]  ;;  %s459_s17 = scalar_lea.vmem %s1674_s0, %s902_s22  ;;  %v465_v16 = vld [vmem:[#allocation2 + $0x20] sm:$0xff]  ;;  %s434_s27 = scalar_lea.vmem [#allocation10], %s1510_s2 }
  0x67   : > { %517 = vmatpush.msra.mxu1 %v474_v7  ;;  %497 = vmatpush.msra.mxu0 %v473_v8  ;;  %v464_v17 = vld [vmem:[#allocation2 + $0x18] sm:$0xff]  ;;  %v463_v18 = vld [vmem:[#allocation2 + $0x10] sm:$0xff]  ;;  %v462_v19 = vld [vmem:[#allocation2 + $0x8] sm:$0xff]  ;;  %s631_s1 = scalar_lea.hbm %s1681_s7, %s1538_s19  ;;  %s645_s23 = scalar_lea.hbm %s1682_s8, %s1538_s19 }
  0x68   : > { %538 = vmatpush.msra.mxu2 %v472_v9  ;;  %v460_v20 = vld [vmem:[%s459_s17] sm:$0xff]  ;;  %v1004_v23 = vpop.eup %1003  ;;  %v546_v29 = vld [vmem:[%s373_s10] sm:$0xff]  ;;  %s603_s10 = scalar_lea.hbm %s1679_s5, %s1538_s19  ;;  %s1576_s13 = sshll.u32 %s631_s1, 4  ;;  %s636_s13 = int_to_ptr.hbm [resolvable:$true] %s1576_s13 }
  0x69   : > { %518 = vmatpush.msra.mxu1 %v471_v10  ;;  %498 = vmatpush.msra.mxu0 %v470_v11  ;;  %v461_v21 = vld [vmem:[#allocation2] sm:$0xff]  ;;  %v553_v24 = vmul.f32 3.0, %v1004_v23  ;;  %vm557_vm1 = vweird.f32 %v1004_v23  ;;  %v547_v31 = vmul.f32 0.9, %v546_v29  ;;  %v561_v34 = vld [vmem:[%s393_s18] sm:$0xff]  ;;  %s1557_s18 = sshll.u32 %s434_s27, 4  ;;  %s606_s18 = int_to_ptr.vmem [resolvable:$true] %s1557_s18 }
  0x6a   : > { %539 = vmatpush.msra.mxu2 %v469_v12  ;;  %v549_v27 = vld [vmem:[%s383_s30] sm:$0xff]  ;;  %v562_v39 = vmul.f32 0.9, %v561_v34  ;;  %s1553_s30 = sshll.u32 %s617_s26, 4  ;;  %s1559_s24 = sshll.u32 %s603_s10, 4  ;;  %s608_s24 = int_to_ptr.hbm [resolvable:$true] %s1559_s24  ;;  %s622_s30 = int_to_ptr.hbm [resolvable:$true] %s1553_s30 }
  0x6b   : > { %519 = vmatpush.msra.mxu1 %v468_v13  ;;  %499 = vmatpush.msra.mxu0 %v467_v14  ;;  %v554_v25 = vsub.f32 1.0, %v553_v24  ;;  %v550_v30 = vmul.f32 0.9, %v549_v27  ;;  %s1692_s26 = scalar_lea.vmem [#allocation13], %s1510_s2  ;;  %s455_s10 = scalar_lea.vmem [#allocation14], %s1510_s2 }
  0x6c   : > { %540 = vmatpush.msra.mxu2 %v466_v15  ;;  %s1574_s12 = sshll.u32 %s1692_s26, 4  ;;  %s1581_s22 = sshll.u32 %s455_s10, 4  ;;  %s634_s12 = int_to_ptr.vmem [resolvable:$true] %s1574_s12  ;;  %s648_s22 = int_to_ptr.vmem [resolvable:$true] %s1581_s22 }
  0x6d   : > { %520 = vmatpush.msra.mxu1 %v465_v16  ;;  %500 = vmatpush.msra.mxu0 %v464_v17  ;;  %v555_v26 = vmul.f32 %v1004_v23, %v554_v25  ;;  %s1583_s11 = sshll.u32 %s645_s23, 4  ;;  %s578_s19 = scalar_lea.sflag [#allocation4], %s1507_s15  ;;  %s650_s11 = int_to_ptr.hbm [resolvable:$true] %s1583_s11 }
  0x6e   : > { %541 = vmatpush.msra.mxu2 %v463_v18  ;;  %s1139_s17 = sshra.s32 %s608_s24, 4  ;;  %s1145_s1 = scalar_lea.hbm %s1679_s5, 16  ;;  %s1140_s17 = int_to_ptr.hbm [resolvable:$true] %s1139_s17 }
  0x6f   : > { %521 = vmatpush.msra.mxu1 %v462_v19  ;;  %905 = vmatmul.msk.f32.vlgmr.msra.gmra.mxu2 %vm482_vm0, %v460_v20  ;;  %v556_v28 = vadd.f32 %v1004_v23, %v555_v26  ;;  %s1141_s25 = scalar_lea.hbm %s1140_s17, 8  ;;  %p1146_p13 = scmp.lt.s32.totalorder %s1140_s17, %s1679_s5 }
  0x70   : > { %904 = vmatmul.msk.f32.vlgmr.msra.gmra.mxu1 %vm482_vm0, %v460_v20  ;;  %501 = vmatpush.msra.mxu0 %v461_v21  ;;  %p1142_p1 = scmp.ne.s32.totalorder %s1140_s17, %s1141_s25  ;;  %p1147_p0 = scmp.lt.s32.totalorder %s1145_s1, %s1141_s25 }
  0x71   : > { %903 = vmatmul.msk.f32.vlgmr.msra.gmra.mxu0 %vm482_vm0, %v460_v20  ;;  %v558_v33 = vsel %vm557_vm1, %v1004_v23, %v556_v28 }
  0x72   : > { %p1143_p2 = pnand %p1142_p1, %p1386_p6  ;;  %p1148_p7 = por %p1147_p0, %p1146_p13 }
  0x74   : > { %p1144_p5 = pneg %p1143_p2 }
  0x76   : > { %p1149_p3 = pnand %p1148_p7, %p1144_p5 }
  0xed   : > { %v523_v32 = vpop.f32.mrf.mxu1 }
  0xee   : > { %v551_v35 = vadd.f32 %v550_v30, %v523_v32  ;;  %v503_v36 = vpop.f32.mrf.mxu0 }
  0xef   : > { %v548_v38 = vadd.f32 %v547_v31, %v503_v36 }
  0xf0   : > { %v559_v37 = vmul.f32 %v558_v33, %v551_v35 }
  0xf2   : > { %v543_v40 = vpop.f32.mrf.mxu2  ;;  %v560_v41 = vadd.f32 %v559_v37, %v548_v38 }
  0xf3   : > { %v563_v42 = vadd.f32 %v562_v39, %v543_v40 }
  0xf5   : > { %v564_v43 = vmul.f32 %v563_v42, %v558_v33 }
  0xf7   : > { %v565_v44 = vadd.f32 %v564_v43, %v560_v41 }
  0xf9   : > { %vm566_vm2 = vcmp.gt.f32.partialorder %v565_v44, 0.5 }
  0xfa   : > { %v906_v46 = vsel %vm566_vm2, 1.0, %v1297_v45 }
  0xfb   : > { %v570_v47 = vsub.f32 1.0, %v906_v46  ;;  %569 = vst [vmem:[%s434_s27] sm:$0xff] %v906_v46 }
  0xfc   : > { %1152 = shalt.err (!%p1149_p3)
}
  0xfd   : > { %927 = dma.vmem_to_hbm [thread:$0]  (%p1386_p6), %s606_s18, 128, %s608_s24, %s578_s19   ;;  %v573_v48 = vmul.f32 %v570_v47, %v551_v35  ;;  %v575_v49 = vmul.f32 %v570_v47, %v563_v42  ;;  %v571_v50 = vmul.f32 %v570_v47, %v548_v38 }
  0xfe   : > { %s1715_s20 = sand.u32 1, %s1364_s9   ;;  %s1167_s23 = sshra.s32 %s622_s30, 4  ;;  %s1168_s23 = int_to_ptr.hbm [resolvable:$true] %s1167_s23 }
  0xff   : > { %572 = vst [vmem:[%s441_s14] sm:$0xff] %v571_v50  ;;  %s583_s21 = scalar_lea.sflag [#allocation12], %s1715_s20  ;;  %s1169_s26 = scalar_lea.hbm %s1168_s23, 8 }
 0x100   : > { %p1170_p9 = scmp.ne.s32.totalorder %s1168_s23, %s1169_s26  ;;  %s1173_s19 = scalar_lea.hbm %s1680_s6, 16 }
 0x101   : > { %p1174_p12 = scmp.lt.s32.totalorder %s1168_s23, %s1680_s6  ;;  %p1175_p11 = scmp.lt.s32.totalorder %s1173_s19, %s1169_s26 }
 0x102   : > { %p1171_p8 = pnand %p1170_p9, %p1386_p6 }
 0x103   : > { %p1176_p1 = por %p1175_p11, %p1174_p12 }
 0x104   : > { %p1172_p4 = pneg %p1171_p8 }
 0x106   : > { %p1177_p2 = pnand %p1176_p1, %p1172_p4 }
 0x108   : > { %1180 = shalt.err (!%p1177_p2)
}
 0x109   : > { %s1716_s9 = sld [smem:[#allocation27_spill]]  ;;  %s1718_s1 = scalar_lea.vmem [#allocation13], %s1510_s2 }
 0x10a   : > { %574 = vst [vmem:[%s1718_s1] sm:$0xff] %v573_v48  ;;  %s1195_s27 = sshra.s32 %s636_s13, 4  ;;  %s1201_s18 = scalar_lea.hbm %s1681_s7, 16  ;;  %s1196_s27 = int_to_ptr.hbm [resolvable:$true] %s1195_s27 }
 0x10b   : > { %s1197_s20 = scalar_lea.hbm %s1196_s27, 8  ;;  %p1202_p7 = scmp.lt.s32.totalorder %s1196_s27, %s1681_s7 }
 0x10c   : > { %p1198_p5 = scmp.ne.s32.totalorder %s1196_s27, %s1197_s20  ;;  %p1203_p3 = scmp.lt.s32.totalorder %s1201_s18, %s1197_s20 }
 0x10e   : > { %p1199_p13 = pnand %p1198_p5, %p1386_p6  ;;  %p1204_p9 = por %p1203_p3, %p1202_p7 }
 0x10f   : > { %s1717_s14 = int_to_ptr.vmem [resolvable:$true] %s1716_s9 }
 0x110   : > { %928 = dma.vmem_to_hbm [thread:$0]  (%p1386_p6), %s1717_s14, 128, %s622_s30, %s583_s21  }
 0x111   : > { %p1200_p0 = pneg %p1199_p13 }
 0x113   : > { %p1205_p8 = pnand %p1204_p9, %p1200_p0 }
 0x115   : > { %1208 = shalt.err (!%p1205_p8)
}
 0x116   : > { %929 = dma.vmem_to_hbm [thread:$0]  (%p1386_p6), %s634_s12, 128, %s636_s13, %s583_s21   ;;  %576 = vst [vmem:[%s455_s10] sm:$0xff] %v575_v49 }
 0x117   : > { %s593_s30 = scalar_lea.sflag [#allocation15], %s1507_s15  ;;  %s1223_s17 = sshra.s32 %s650_s11, 4  ;;  %s1224_s17 = int_to_ptr.hbm [resolvable:$true] %s1223_s17 }
 0x118   : > { %s1225_s25 = scalar_lea.hbm %s1224_s17, 8  ;;  %s1229_s1 = scalar_lea.hbm %s1682_s8, 16 }
 0x119   : > { %p1226_p4 = scmp.ne.s32.totalorder %s1224_s17, %s1225_s25  ;;  %p1230_p1 = scmp.lt.s32.totalorder %s1224_s17, %s1682_s8 }
 0x11a   : > { %p1231_p2 = scmp.lt.s32.totalorder %s1229_s1, %s1225_s25 }
 0x11b   : > { %p1227_p12 = pnand %p1226_p4, %p1386_p6 }
 0x11c   : > { %p1232_p5 = por %p1231_p2, %p1230_p1 }
 0x11d   : > { %p1228_p11 = pneg %p1227_p12 }
 0x11f   : > { %p1233_p13 = pnand %p1232_p5, %p1228_p11 }
 0x121   : > { %1236 = shalt.err (!%p1233_p13)
}
 0x122   : > { %930 = dma.vmem_to_hbm [thread:$0]  (%p1386_p6), %s648_s22, 128, %s650_s11, %s593_s30  }
 0x123 PF: > { %s1719_s15 = sld [smem:[#allocation22_spill]] }
 0x124   : > { %s1721_s12 = sld [smem:[#allocation23_spill]] }
 0x129   : > { %s661_s13 = sand.u32 1, %s1719_s15  }
 0x12a   : > { %p1722_p0 = scmp.ge.s32.totalorder %s1721_s12, 2  ;;  %s662_s10 = scalar_lea.sflag [#allocation4], %s661_s13 }
 0x12c   : > { %p950_p7 = pnand %p1722_p0, %p1397_p10 }
 0x12e   : > { %p951_p3 = pneg %p950_p7 }
 0x130   : > { %1266 = dma.done.wait (%p951_p3), %s662_s10, 128  }
 0x131   : > { %1268 = vsyncadd (%p951_p3), %s662_s10, 4294967168  ;;  %s1723_s21 = sadd.s32 4294967294, %s1721_s12  }
 0x132   : > { %s671_s16 = sand.u32 1, %s1723_s21  }
 0x133   : > { %s672_s23 = scalar_lea.sflag [#allocation12], %s671_s16 }
 0x134   : > { %1270 = dma.done.wait (%p951_p3), %s672_s23, 256  }
 0x135   : > { %1272 = vsyncadd (%p951_p3), %s672_s23, 4294967040  ;;  %s692_s26 = scalar_lea.sflag [#allocation15], %s661_s13 }
 0x136   : > { %1274 = dma.done.wait (%p951_p3), %s692_s26, 128  }
 0x137   : > { %1276 = vsyncadd (%p951_p3), %s692_s26, 4294967168  ;;  %s1724_s30 = sld [smem:[#allocation24_spill]]  ;;  %s1726_s27 = smov %s1283_s28 }
 0x138   : > { %s1725_s22 = sld [smem:[#allocation25_spill]]  ;;  %s1727_s28 = smov %s1287_s29 }
 0x13d   : > { %p32_p6 = scmp.ge.s32.totalorder %s1724_s30, 4  }
 0x13e   : > { %s1728_s29 = smov %s1725_s22 }
 0x13f   :  { %34 = sbr.rel (!%p32_p6) target bundleno = 15 (0xf), region = 166 }
 0x144   :  { %698 = vsyncpa [#allocation3], 1 }
 0x145   :  { %700 = vsyncpa [#allocation3 + $0x1], 1 }
 0x146   :  { %701 = vsyncpa [#allocation6], 1 }
 0x147   :  { %703 = vsyncpa [#allocation6 + $0x1], 1 }
 0x148   :  { %704 = vsyncpa [#allocation9], 1 }
 0x149   :  { %706 = vsyncpa [#allocation9 + $0x1], 1 }
 0x14a   :  { %707 = vsyncpa [#allocation4], 1 }
 0x14b   :  { %709 = vsyncpa [#allocation4 + $0x1], 1 }
 0x14c   :  { %710 = vsyncpa [#allocation12], 1 }
 0x14d   :  { %712 = vsyncpa [#allocation12 + $0x1], 1 }
 0x14e   :  { %713 = vsyncpa [#allocation15], 1 }
 0x14f   :  { %715 = vsyncpa [#allocation15 + $0x1], 1 }

</bundles_post_ra>
